<compile_context>
chip_gen: v5e
topology: v5e:2x2
jax: 0.10.0
libtpu: 0.0.40
codegen_flags: <defaults>
</compile_context>

<pallas_src>
import functools

import jax
import jax.numpy as jnp
from jax.experimental import pallas as pl
from jax.experimental.pallas import tpu as pltpu

EPS = 1e-8  # torchhd cosine_similarity epsilon


def _round_up(n: int, m: int) -> int:
    return ((n + m - 1) // m) * m


def disthd_forward_kernel(x_ref, w_enc_ref, w_cls_ref, cls_mag_ref, out_ref,
                          dots_acc, sq_acc, *, approx_recip: bool):
    # x_ref:       (TB, F)    sample tile (same block for every D step)
    # w_enc_ref:   (F, tD)    encoder projection tile (column slice of D)
    # w_cls_ref:   (tD, Cp)   centroid weight tile (row slice of D)
    # cls_mag_ref: (1, Cp)    precomputed |W_cls[c]| (grid-invariant)
    # out_ref:     (TB, Cp)   cosine scores (written on the last D step)
    # dots_acc:    (TB, Cp)   f32 scratch accumulator for dot products
    # sq_acc:      (TB, 1)    f32 scratch accumulator for ||enc||^2
    k = pl.program_id(1)

    @pl.when(k == 0)
    def _init():
        dots_acc[...] = jnp.zeros_like(dots_acc)
        sq_acc[...] = jnp.zeros_like(sq_acc)

    # Projection encoder slice along D: enc[:, dk] = x @ W_enc_t[:, dk]
    enc = jnp.dot(x_ref[...], w_enc_ref[...], preferred_element_type=jnp.float32)

    # Accumulate class dot-products and squared encoding norm over D tiles.
    dots_acc[...] += jnp.dot(enc.astype(w_cls_ref.dtype), w_cls_ref[...],
                             preferred_element_type=jnp.float32)
    sq_acc[...] += jnp.sum(enc * enc, axis=-1, keepdims=True)

    @pl.when(k == pl.num_programs(1) - 1)
    def _finalize():
        # torchhd MAPTensor.cosine_similarity: dots / max(|enc|*|cls|, eps)
        enc_mag = jnp.sqrt(sq_acc[...])                           # (TB, 1)
        magnitude = jnp.maximum(enc_mag * cls_mag_ref[...], EPS)  # (TB, Cp)
        out_ref[...] = (dots_acc[...] *
                        pl.reciprocal(magnitude, approx=approx_recip)
                        ).astype(out_ref.dtype)


def prepare_disthd_weights(w_enc_t, w_cls_t, *, weights_dtype=jnp.float32,
                           tile_d=None):
    """One-time weight preparation (run at setup / after each centroid update).

    w_enc_t: (F, D) encoder projection, transposed vs torch's (D, F) weight.
    w_cls_t: (D, C) centroid weights, transposed vs torch's (C, D) weight.
    """
    F_, D = w_enc_t.shape
    D2, C = w_cls_t.shape
    assert D == D2

    Cp = _round_up(C, 128)                      # lane-dense output columns
    if tile_d is None:
        tile_d = min(_round_up(D, 128), 2048)   # stream D for big models
    tile_d = _round_up(tile_d, 128)
    Dp = _round_up(D, tile_d)

    # Zero padding: padded D columns encode to 0 (no contribution to dots or
    # ||enc||^2); padded class columns get norm 0 -> score 0 -> sliced off.
    w_enc_p = jnp.pad(w_enc_t, ((0, 0), (0, Dp - D))) if Dp != D else w_enc_t
    w_cls_p = jnp.pad(w_cls_t, ((0, Dp - D), (0, Cp - C))) \
        if (Dp != D or Cp != C) else w_cls_t

    # Grid-invariant centroid norms, computed once in f32.
    cls_mag = jnp.sqrt(jnp.sum(w_cls_p.astype(jnp.float32) ** 2,
                               axis=0, keepdims=True))            # (1, Cp)

    return {
        "w_enc": w_enc_p.astype(weights_dtype),
        "w_cls": w_cls_p.astype(weights_dtype),
        "cls_mag": cls_mag,
        "n_classes": C,
        "tile_d": tile_d,
    }


def disthd_forward(x, prepared, *, tb=None, approx_recip=None):
    """x: (B, F) -> DistHD.forward cosine scores (B, C)."""
    w_enc = prepared["w_enc"]        # (F, Dp)
    w_cls = prepared["w_cls"]        # (Dp, Cp)
    cls_mag = prepared["cls_mag"]    # (1, Cp) f32
    C = prepared["n_classes"]
    td = prepared["tile_d"]

    B, F_ = x.shape
    F2, Dp = w_enc.shape
    Dp2, Cp = w_cls.shape
    assert F_ == F2 and Dp == Dp2 and Dp % td == 0
    n_k = Dp // td

    wdt = w_enc.dtype
    if approx_recip is None:
        # bf16 weights already sit at ~1e-3 rel error -> free EUP reciprocal.
        approx_recip = (wdt == jnp.bfloat16)

    # Batch tiling: >= 2 parallel grid steps whenever B allows (v7x has two
    # TensorCores); cap the tile so (tb, td) enc temps + (tb, Cp) accumulators
    # stay modest for large D.
    if tb is None:
        tb_cap = 128 if Dp >= 8192 else 256
        tb = min(_round_up(-(-B // 2), 8), tb_cap)
    tb = max(8, _round_up(tb, 8))
    B_pad = _round_up(B, tb)
    x_p = x if B_pad == B else jnp.pad(x, ((0, B_pad - B), (0, 0)))
    if wdt == jnp.bfloat16:
        x_p = x_p.astype(jnp.bfloat16)
    n_b = B_pad // tb

    # Single-buffer any block whose index never changes over the grid.
    def _spec(shape, index_map, single):
        if single:
            return pl.BlockSpec(shape, index_map, pipeline_mode=pl.Buffered(1))
        return pl.BlockSpec(shape, index_map)

    wbytes = jnp.dtype(wdt).itemsize
    xbytes = jnp.dtype(x_p.dtype).itemsize
    wnbuf = 1 if n_k == 1 else 2
    xnbuf = 1 if n_b == 1 else 2
    vmem_need = (
        xnbuf * tb * F_ * xbytes        # x tile
        + wnbuf * F_ * td * wbytes      # encoder weight tile
        + wnbuf * td * Cp * wbytes      # centroid weight tile
        + Cp * 4                        # cls_mag (single-buffered)
        + 2 * tb * Cp * 4               # output tile
        + tb * Cp * 4 + tb * 128 * 4    # accumulator scratch (dots + sq, padded)
        + tb * td * 4                   # enc temporary
    )
    # Headroom, then clamp to a range valid on every chip (<= 64 MiB = v7x).
    vmem_limit = int(min(max(vmem_need * 3 // 2 + (2 << 20), 32 << 20), 64 << 20))

    cost = pl.CostEstimate(
        flops=int(2 * B_pad * Dp * (F_ + Cp)),
        transcendentals=0,
        bytes_accessed=int(x_p.size * xbytes + w_enc.size * wbytes
                           + w_cls.size * wbytes + cls_mag.size * 4
                           + B_pad * Cp * 4),
    )

    kernel = functools.partial(disthd_forward_kernel, approx_recip=approx_recip)

    out = pl.pallas_call(
        kernel,
        out_shape=jax.ShapeDtypeStruct((B_pad, Cp), jnp.float32),
        grid_spec=pltpu.PrefetchScalarGridSpec(
            num_scalar_prefetch=0,
            grid=(n_b, n_k),
            in_specs=[
                _spec((tb, F_), lambda i, k: (i, 0), single=(n_b == 1)),
                _spec((F_, td), lambda i, k: (0, k), single=(n_k == 1)),
                _spec((td, Cp), lambda i, k: (k, 0), single=(n_k == 1)),
                _spec((1, Cp), lambda i, k: (0, 0), single=True),
            ],
            out_specs=pl.BlockSpec((tb, Cp), lambda i, k: (i, 0)),
            scratch_shapes=[
                pltpu.VMEM((tb, Cp), jnp.float32),   # dots accumulator
                pltpu.VMEM((tb, 1), jnp.float32),    # ||enc||^2 accumulator
            ],
        ),
        compiler_params=pltpu.CompilerParams(
            dimension_semantics=("parallel", "arbitrary"),
            vmem_limit_bytes=vmem_limit,
        ),
        cost_estimate=cost,
    )(x_p, w_enc, w_cls, cls_mag)

    return out[:B, :C]


def disthd_forward_ref(x, w_enc_t, w_cls_t):
    """Pure-JAX reference of the same forward semantics (torchhd cosine sim)."""
    enc = x @ w_enc_t
    dots = enc @ w_cls_t
    enc_mag = jnp.sqrt(jnp.sum(enc * enc, axis=-1, keepdims=True))
    cls_mag = jnp.sqrt(jnp.sum(w_cls_t * w_cls_t, axis=0, keepdims=True))
    return dots / jnp.maximum(enc_mag * cls_mag, EPS)


if __name__ == "__main__":
    # Small, DistHD-consistent shapes: n_features=32, n_dimensions=256, n_classes=16
    B, F_, D, C = 16, 32, 256, 16

    key = jax.random.PRNGKey(0)
    kx, kenc, kcls, kx2 = jax.random.split(key, 4)

    x = jax.random.normal(kx, (B, F_), dtype=jnp.float32)
    # Projection.reset_parameters(): weight (D, F) ~ N(0, 1); stored transposed (F, D).
    w_enc_t = jax.random.normal(kenc, (D, F_), dtype=jnp.float32).T
    # Centroid zero-inits in torch; deterministic normal here so the synthetic
    # forward is non-degenerate (stored transposed as (D, C)).
    w_cls_t = jax.random.normal(kcls, (C, D), dtype=jnp.float32).T

    ref = disthd_forward_ref(x, w_enc_t, w_cls_t)

    # Test 1: f32 weights, single D step, auto batch tiling (grid >= 2 steps).
    prep_f32 = prepare_disthd_weights(w_enc_t, w_cls_t)
    out = jax.block_until_ready(disthd_forward(x, prep_f32))
    assert out.shape == (B, C)
    assert jnp.allclose(out, ref, atol=1e-5, rtol=1e-5), "mismatch (f32, single D)"

    # Test 2: f32 weights, D-tiled accumulation (tile_d=128 -> 2 reduction steps),
    # batch not divisible by the tile (padded multi-step grid, tb=128).
    B2 = 300
    x2 = jax.random.normal(kx2, (B2, F_), dtype=jnp.float32)
    prep_f32_dt = prepare_disthd_weights(w_enc_t, w_cls_t, tile_d=128)
    out2 = jax.block_until_ready(disthd_forward(x2, prep_f32_dt, tb=128))
    ref2 = disthd_forward_ref(x2, w_enc_t, w_cls_t)
    assert out2.shape == (B2, C)
    assert jnp.allclose(out2, ref2, atol=1e-5, rtol=1e-5), "mismatch (f32, D-tiled)"

    # Test 3: bf16 weights + inputs (full-rate MXU, half the HBM/VMEM bytes),
    # f32 accumulation, approx reciprocal -> ~1e-3 relative error budget.
    prep_bf16 = prepare_disthd_weights(w_enc_t, w_cls_t,
                                       weights_dtype=jnp.bfloat16, tile_d=128)
    out3 = jax.block_until_ready(disthd_forward(x, prep_bf16))
    assert out3.shape == (B, C)
    assert jnp.allclose(out3, ref, atol=2e-2, rtol=2e-2), "mismatch (bf16)"

    # TODO(synk): fit()/regen_score()/add_online() training logic is host-side
    # control flow (topk, boolean gathers, in-place dimension regeneration) and
    # is out of scope for this forward-pass kernel.

    print("KERNEL_OK")
</pallas_src>

<mosaic_0001>
module attributes {stable_mosaic.version = 11 : i64} {
  func.func @disthd_forward_kernel(%arg0: i32, %arg1: i32, %arg2: memref<8x32xf32, #tpu.memory_space<vmem>>, %arg3: memref<32x256xf32, #tpu.memory_space<vmem>>, %arg4: memref<256x128xf32, #tpu.memory_space<vmem>>, %arg5: memref<1x128xf32, #tpu.memory_space<vmem>>, %arg6: memref<8x128xf32, #tpu.memory_space<vmem>>, %arg7: memref<8x128xf32, #tpu.memory_space<vmem>>, %arg8: memref<8x1xf32, #tpu.memory_space<vmem>>) attributes {dimension_semantics = [#tpu.dimension_semantics<parallel>, #tpu.dimension_semantics<arbitrary>], iteration_bounds = array<i64: 2, 1>, scalar_prefetch = 0 : i64, scratch_operands = 2 : i64, tpu.core_type = #tpu.core_type<tc>, window_params = [{transform_indices = @transform_0, window_bounds = array<i64: 8, 32>}, {pipeline_mode = #tpu.pipeline_mode<synchronous>, transform_indices = @transform_1, window_bounds = array<i64: 32, 256>}, {pipeline_mode = #tpu.pipeline_mode<synchronous>, transform_indices = @transform_2, window_bounds = array<i64: 256, 128>}, {pipeline_mode = #tpu.pipeline_mode<synchronous>, transform_indices = @transform_3, window_bounds = array<i64: 1, 128>}, {transform_indices = @transform_4, window_bounds = array<i64: 8, 128>}]} {
    %c0_i32 = arith.constant 0 : i32
    %0 = arith.cmpi eq, %arg1, %c0_i32 : i32
    %1 = arith.extui %0 : i1 to i32
    %c0_i32_0 = arith.constant 0 : i32
    %2 = arith.cmpi ne, %1, %c0_i32_0 : i32
    scf.if %2 {
      %cst_18 = arith.constant 0.000000e+00 : f32
      %20 = vector.broadcast %cst_18 : f32 to vector<8x128xf32>
      %c0_19 = arith.constant 0 : index
      %c0_20 = arith.constant 0 : index
      %21 = vector.load %arg7[%c0_19, %c0_20] : memref<8x128xf32, #tpu.memory_space<vmem>>, vector<8x128xf32>
      tpu.vector_store %arg7[%c0_19, %c0_20], %20 {strides = array<i32>} : memref<8x128xf32, #tpu.memory_space<vmem>>, vector<8x128xf32>,
      %cst_21 = arith.constant 0.000000e+00 : f32
      %22 = vector.broadcast %cst_21 : f32 to vector<8x1xf32>
      %c0_22 = arith.constant 0 : index
      %c0_23 = arith.constant 0 : index
      %23 = vector.load %arg8[%c0_22, %c0_23] : memref<8x1xf32, #tpu.memory_space<vmem>>, vector<8x1xf32>
      tpu.vector_store %arg8[%c0_22, %c0_23], %22 {strides = array<i32>} : memref<8x1xf32, #tpu.memory_space<vmem>>, vector<8x1xf32>,
    } else {
    }
    %c0 = arith.constant 0 : index
    %c0_1 = arith.constant 0 : index
    %3 = vector.load %arg2[%c0, %c0_1] : memref<8x32xf32, #tpu.memory_space<vmem>>, vector<8x32xf32>
    %c0_2 = arith.constant 0 : index
    %c0_3 = arith.constant 0 : index
    %4 = vector.load %arg3[%c0_2, %c0_3] : memref<32x256xf32, #tpu.memory_space<vmem>>, vector<32x256xf32>
    %cst = arith.constant dense<0.000000e+00> : vector<8x256xf32>
    %5 = tpu.matmul %3, %4, %cst {dimension_numbers = #tpu.dot_dimension_numbers<[1], [0], [0], [1], [0, 0, 1, 1], [], []>} : vector<8x32xf32>, vector<32x256xf32>, vector<8x256xf32> -> vector<8x256xf32>
    %c0_4 = arith.constant 0 : index
    %c0_5 = arith.constant 0 : index
    %6 = vector.load %arg7[%c0_4, %c0_5] : memref<8x128xf32, #tpu.memory_space<vmem>>, vector<8x128xf32>
    %c0_6 = arith.constant 0 : index
    %c0_7 = arith.constant 0 : index
    %7 = vector.load %arg4[%c0_6, %c0_7] : memref<256x128xf32, #tpu.memory_space<vmem>>, vector<256x128xf32>
    %cst_8 = arith.constant dense<0.000000e+00> : vector<8x128xf32>
    %8 = tpu.matmul %5, %7, %cst_8 {dimension_numbers = #tpu.dot_dimension_numbers<[1], [0], [0], [1], [0, 0, 1, 1], [], []>} : vector<8x256xf32>, vector<256x128xf32>, vector<8x128xf32> -> vector<8x128xf32>
    %9 = arith.addf %6, %8 : vector<8x128xf32>
    %c0_9 = arith.constant 0 : index
    %c0_10 = arith.constant 0 : index
    %10 = vector.load %arg7[%c0_9, %c0_10] : memref<8x128xf32, #tpu.memory_space<vmem>>, vector<8x128xf32>
    tpu.vector_store %arg7[%c0_9, %c0_10], %9 {strides = array<i32>} : memref<8x128xf32, #tpu.memory_space<vmem>>, vector<8x128xf32>,
    %c0_11 = arith.constant 0 : index
    %c0_12 = arith.constant 0 : index
    %11 = vector.load %arg8[%c0_11, %c0_12] : memref<8x1xf32, #tpu.memory_space<vmem>>, vector<8x1xf32>
    %12 = arith.mulf %5, %5 : vector<8x256xf32>
    %cst_13 = arith.constant dense<0.000000e+00> : vector<8xf32>
    %13 = vector.multi_reduction <add>, %12, %cst_13 [1] : vector<8x256xf32> to vector<8xf32>
    %14 = vector.shape_cast %13 : vector<8xf32> to vector<8x1xf32>
    %15 = arith.addf %11, %14 : vector<8x1xf32>
    %c0_14 = arith.constant 0 : index
    %c0_15 = arith.constant 0 : index
    %16 = vector.load %arg8[%c0_14, %c0_15] : memref<8x1xf32, #tpu.memory_space<vmem>>, vector<8x1xf32>
    tpu.vector_store %arg8[%c0_14, %c0_15], %15 {strides = array<i32>} : memref<8x1xf32, #tpu.memory_space<vmem>>, vector<8x1xf32>,
    %c0_i32_16 = arith.constant 0 : i32
    %17 = arith.cmpi eq, %arg1, %c0_i32_16 : i32
    %18 = arith.extui %17 : i1 to i32
    %c0_i32_17 = arith.constant 0 : i32
    %19 = arith.cmpi ne, %18, %c0_i32_17 : i32
    scf.if %19 {
      %c0_18 = arith.constant 0 : index
      %c0_19 = arith.constant 0 : index
      %20 = vector.load %arg8[%c0_18, %c0_19] : memref<8x1xf32, #tpu.memory_space<vmem>>, vector<8x1xf32>
      %21 = math.sqrt %20 : vector<8x1xf32>
      %c0_20 = arith.constant 0 : index
      %c0_21 = arith.constant 0 : index
      %22 = vector.load %arg5[%c0_20, %c0_21] : memref<1x128xf32, #tpu.memory_space<vmem>>, vector<1x128xf32>
      %23 = vector.broadcast %21 : vector<8x1xf32> to vector<8x128xf32>
      %24 = vector.broadcast %22 : vector<1x128xf32> to vector<8x128xf32>
      %25 = arith.mulf %23, %24 : vector<8x128xf32>
      %cst_22 = arith.constant 9.99999993E-9 : f32
      %26 = vector.broadcast %cst_22 : f32 to vector<8x128xf32>
      %27 = arith.maximumf %25, %26 : vector<8x128xf32>
      %c0_23 = arith.constant 0 : index
      %c0_24 = arith.constant 0 : index
      %28 = vector.load %arg7[%c0_23, %c0_24] : memref<8x128xf32, #tpu.memory_space<vmem>>, vector<8x128xf32>
      %29 = tpu.reciprocal %27 : vector<8x128xf32> -> vector<8x128xf32>
      %30 = arith.mulf %28, %29 : vector<8x128xf32>
      %c0_25 = arith.constant 0 : index
      %c0_26 = arith.constant 0 : index
      %31 = vector.load %arg6[%c0_25, %c0_26] : memref<8x128xf32, #tpu.memory_space<vmem>>, vector<8x128xf32>
      tpu.vector_store %arg6[%c0_25, %c0_26], %30 {strides = array<i32>} : memref<8x128xf32, #tpu.memory_space<vmem>>, vector<8x128xf32>,
    } else {
    }
    return
  }
  func.func @transform_0(%arg0: i32, %arg1: i32) -> (i32, i32) {
    %c0_i32 = arith.constant 0 : i32
    %c0_i32_0 = arith.constant 0 : i32
    return %arg0, %c0_i32 : i32, i32
  }
  func.func @transform_1(%arg0: i32, %arg1: i32) -> (i32, i32) {
    %c0_i32 = arith.constant 0 : i32
    %c0_i32_0 = arith.constant 0 : i32
    return %c0_i32, %arg1 : i32, i32
  }
  func.func @transform_2(%arg0: i32, %arg1: i32) -> (i32, i32) {
    %c0_i32 = arith.constant 0 : i32
    %c0_i32_0 = arith.constant 0 : i32
    return %arg1, %c0_i32 : i32, i32
  }
  func.func @transform_3(%arg0: i32, %arg1: i32) -> (i32, i32) {
    %c0_i32 = arith.constant 0 : i32
    %c0_i32_0 = arith.constant 0 : i32
    %c0_i32_1 = arith.constant 0 : i32
    return %c0_i32, %c0_i32_0 : i32, i32
  }
  func.func @transform_4(%arg0: i32, %arg1: i32) -> (i32, i32) {
    %c0_i32 = arith.constant 0 : i32
    %c0_i32_0 = arith.constant 0 : i32
    return %arg0, %c0_i32 : i32, i32
  }
}

</mosaic_0001>

<bundles_post_ra>
// kernel: tpu_custom_call.1
= control target key start
LH: loop header
LB: loop body
LE: loop exit
PB: predicated region body
PF: predicated region fallthrough
CT: control target
= control target key end

     0   :  { %9 = vsyncpa [#allocation5], 0  ;;  %s1061_s0 = inlined_call_operand.hbm [shape: f32[16,32], index: 0, kind: input, shape index: {}]   ;;  %s1062_s1 = inlined_call_operand.hbm [shape: f32[32,256], index: 1, kind: input, shape index: {}]   ;;  %s1063_s2 = inlined_call_operand.hbm [shape: f32[256,128], index: 2, kind: input, shape index: {}]   ;;  %s1064_s3 = inlined_call_operand.vmem [shape: f32[1,128], index: 3, kind: input, shape index: {}]   ;;  %s1065_s4 = inlined_call_operand.hbm [shape: f32[16,128], index: 4, kind: output, shape index: {}]  }
   0x1   :  { %11 = vsyncpa [#allocation5 + $0x1], 0 }
   0x2   :  { %12 = vsyncpa [#allocation8], 0 }
   0x3   :  { %13 = vsyncpa [#allocation6], 0 }
   0x4   :  { %15 = vsyncpa [#allocation6 + $0x1], 0  ;;  %s908_s15 = smov 0   ;;  %s910_s16 = smov 0  }
   0x5   :  { %s912_s17 = smov 0   ;;  %s914_s18 = smov 0  }
   0x6   :  { %s916_s19 = smov 0   ;;  %s918_s20 = smov 0  }
   0x7 LB: > { %s583_s21 = sadd.s32 4294967295, %s873_s20   ;;  %p585_p0 = scmp.ge.s32.totalorder %s873_s20, 1  ;;  %s873_s20 = sphi %s918_s20, %s21_s20   ;;  %s869_s19 = sphi %s916_s19, %s1075_s19   ;;  %s865_s18 = sphi %s914_s18, %s1074_s18   ;;  %s861_s17 = sphi %s912_s17, %s1073_s17   ;;  %s857_s16 = sphi %s910_s16, %s1072_s16   ;;  %s853_s15 = sphi %s908_s15, %s1071_s15  }
   0x8   : > { %p942_p1 = scmp.eq.s32.totalorder %s583_s21, 0  ;;  %p163_p2 = scmp.lt.s32.totalorder %s873_s20, 3 }
   0x9   : > { %s177_s25 = sshll.u32 %s1062_s1, 4  ;;  %s875_s27 = smov [#allocation7]   ;;  %s178_s25 = int_to_ptr.hbm [resolvable:$true] %s177_s25 }
   0xa   : > { %p950_p3 = pnand %p585_p0, %p163_p2  ;;  %s179_s28 = sshll.u32 %s875_s27, 4  ;;  %s180_s28 = int_to_ptr.vmem [resolvable:$true] %s179_s28 }
   0xb   : > { %p588_p6 = scmp.ge.s32.totalorder %s873_s20, 2  ;;  %s194_s5 = sshll.u32 %s1063_s2, 4  ;;  %s195_s5 = int_to_ptr.hbm [resolvable:$true] %s194_s5 }
   0xc   : > { %p614_p4 = pneg %p950_p3  ;;  %s876_s6 = smov 256  }
   0xd   : > { %s877_s7 = smov 16   ;;  %s878_s8 = smov [#allocation9]  }
   0xe   : > { %p615_p5 = pnand %p614_p4, %p942_p1  ;;  %s196_s9 = sshll.u32 %s878_s8, 4  ;;  %s197_s9 = int_to_ptr.vmem [resolvable:$true] %s196_s9 }
   0xf   : > { %s879_s10 = smov 128   ;;  %s880_s11 = smov 8  }
  0x10   : > { %617 = dma.hbm_to_vmem [thread:$0]  (!%p615_p5), %s178_s25, 1024, %s180_s28, [#allocation8], %s876_s6, %s876_s6, %s877_s7  }
  0x11   : > { %620 = dma.hbm_to_vmem [thread:$0]  (!%p615_p5), %s195_s5, 4096, %s197_s9, [#allocation8], %s879_s10, %s879_s10, %s880_s11  }
  0x12   : > { %s33_s12 = sadd.s32 1, %s869_s19  ;;  %s584_s13 = sadd.s32 4294967294, %s873_s20  }
  0x13   : > { %p35_p7 = scmp.ge.s32.totalorder %s33_s12, 2  ;;  %s40_s14 = sadd.s32 1, %s861_s17 }
  0x14   : > { %p47_p8 = scmp.ne.s32.totalorder %s861_s17, %s857_s16  ;;  %p48_p9 = scmp.eq.s32.totalorder %s873_s20, 0 }
  0x15   : > { %s1077_s12 = smov (%p35_p7, %s33_s12), 0  ;;  %p53_p10 = scmp.ne.s32.totalorder %s857_s16, %s853_s15 }
  0x16   : > { %s37_s23 = ssub.s32 %s869_s19, %s1077_s12  ;;  %p150_p11 = scmp.eq.s32.totalorder %s583_s21, 1 }
  0x17   : > { %p38_p12 = scmp.eq.s32.totalorder %s37_s23, 0  ;;  %p978_p13 = por %p942_p1, %p53_p10 }
  0x18   : > { %p982_p0 = por %p150_p11, %p47_p8  ;;  %p156_p2 = scmp.eq.s32.totalorder %s584_s13, 1 }
  0x19   : > { %s987_s27 = scalar_select %p38_p12, %s861_s17, %s40_s14  }
  0x1a   : > { %p49_p4 = por %p48_p9, %p47_p8  ;;  %p989_p5 = por %p156_p2, %p53_p10 }
  0x1b   : > { %s213_s29 = sand.u32 1, %s861_s17   ;;  %s590_s21 = sshll.u32 %s869_s19, 3 }
  0x1c   : > { %p631_p7 = scmp.lt.s32.totalorder %s873_s20, 2  ;;  %s589_s30 = sshll.u32 %s213_s29, 3 }
  0x1d   : > { %s221_s7 = scalar_lea.hbm %s1061_s0, %s590_s21  ;;  %s217_s9 = scalar_lea.vmem [#allocation4], %s589_s30 }
  0x1e   : > { %s223_s8 = sshll.u32 %s221_s7, 4  ;;  %s225_s10 = sshll.u32 %s217_s9, 4  ;;  %s224_s8 = int_to_ptr.hbm [resolvable:$true] %s223_s8  ;;  %s226_s10 = int_to_ptr.vmem [resolvable:$true] %s225_s10 }
  0x1f   : > { %p622_p11 = pnand %p631_p7, %p49_p4  ;;  %s214_s11 = scalar_lea.sflag [#allocation5], %s213_s29 }
  0x20   : > { %234 = sbr.rel (%p950_p3) target bundleno = 467 (0x1d3), region = 36  ;;  %s1002_s13 = sand.u32 (!%p950_p3), 1, %s857_s16  }
  0x21   : > { %624 = dma.hbm_to_vmem [thread:$0]  (!%p622_p11), %s224_s8, 128, %s226_s10, %s214_s11  }
  0x22   : > { %s592_s14 = sshll.u32 (!%p950_p3), %s1002_s13, 3  ;;  %s237_s23 = scalar_lea.sflag (!%p950_p3), [#allocation5], %s1002_s13 }
  0x23   : > { %s240_s21 = scalar_lea.vmem (!%p950_p3), [#allocation4], %s592_s14 }
  0x25   : > { %840 = dma.done.wait (%p978_p13), %s237_s23, 128  }
  0x26   : > { %842 = vsyncadd (%p978_p13), %s237_s23, 4294967168 }
  0x27   : > { %844 = dma.done.wait (%p942_p1), [#allocation8], 5120  }
  0x28   : > { %846 = vsyncadd (%p942_p1), [#allocation8], 4294962176  ;;  %v292_v0 = vld [vmem:[#allocation7 + $0x30] sm:$0xff]  ;;  %v293_v1 = vld [vmem:[#allocation7 + $0x38] sm:$0xff]  ;;  %vm294_vm0 = vcmask 261120   ;;  %vm283_vm1 = vcmask 7168  }
  0x29   : > { %v290_v2 = vld [vmem:[#allocation7 + $0x20] sm:$0xff]  ;;  %310 = vmatpush.msra.mxu0 %v292_v0  ;;  %330 = vmatpush.msra.mxu1 %v293_v1  ;;  %v291_v3 = vld [vmem:[#allocation7 + $0x28] sm:$0xff]  ;;  %v288_v4 = vld [vmem:[#allocation7 + $0x10] sm:$0xff]  ;;  %v881_v41 = vmov 0.0   ;;  %v882_v47 = vmov 0   ;;  %s599_s24 = sshll.u32 %s865_s18, 3 }
  0x2a   : > { %v289_v5 = vld [vmem:[#allocation7 + $0x18] sm:$0xff]  ;;  %v353_v8 = vld [vmem:[#allocation9 + $0x70] sm:$0xff]  ;;  %v286_v9 = vld [vmem:[#allocation7] sm:$0xff]  ;;  %284 = vst.msk [vmem:[#allocation3] sm:$0xff] %vm283_vm1, %v881_v41  ;;  %691 = vset.pattern.permute.xlu0 %v882_v47  ;;  %s477_s5 = scalar_lea.hbm %s1065_s4, %s599_s24  ;;  %s275_s6 = scalar_lea.vmem [#allocation10], %s592_s14 }
  0x2b   : > { %311 = vmatpush.msra.mxu0 %v290_v2  ;;  %331 = vmatpush.msra.mxu1 %v291_v3  ;;  %v354_v6 = vld [vmem:[#allocation9 + $0x78] sm:$0xff]  ;;  %v287_v10 = vld [vmem:[#allocation7 + $0x8] sm:$0xff]  ;;  %v369_v11 = vld [vmem:[#allocation9 + $0xf0] sm:$0xff]  ;;  %s479_s18 = sshll.u32 %s275_s6, 4  ;;  %s481_s7 = sshll.u32 %s477_s5, 4  ;;  %s480_s18 = int_to_ptr.vmem [resolvable:$true] %s479_s18  ;;  %s482_s7 = int_to_ptr.hbm [resolvable:$true] %s481_s7 }
  0x2c   : > { %v370_v7 = vld [vmem:[#allocation9 + $0xf8] sm:$0xff]  ;;  %371 = vmatpush.msra.mxu2 %v354_v6  ;;  %v352_v13 = vld [vmem:[#allocation9 + $0x68] sm:$0xff]  ;;  %v351_v15 = vld [vmem:[#allocation9 + $0x60] sm:$0xff]  ;;  %s467_s8 = scalar_lea.sflag [#allocation6], %s1002_s13  ;;  %s801_s9 = sshra.s32 %s482_s7, 4  ;;  %s802_s9 = int_to_ptr.hbm [resolvable:$true] %s801_s9 }
  0x2d   : > { %391 = vmatpush.msra.mxu3 %v370_v7  ;;  %312 = vmatpush.msra.mxu0 %v288_v4  ;;  %v285_v12 = vld [vmem:[%s240_s21] sm:$0xff]  ;;  %v368_v14 = vld [vmem:[#allocation9 + $0xe8] sm:$0xff]  ;;  %v367_v16 = vld [vmem:[#allocation9 + $0xe0] sm:$0xff]  ;;  %s803_s10 = scalar_lea.hbm %s802_s9, 8  ;;  %s807_s23 = scalar_lea.hbm %s1065_s4, 16 }
  0x2e   : > { %332 = vmatpush.msra.mxu1 %v289_v5  ;;  %372 = vmatpush.msra.mxu2 %v353_v8  ;;  %v350_v17 = vld [vmem:[#allocation9 + $0x58] sm:$0xff]  ;;  %v349_v19 = vld [vmem:[#allocation9 + $0x50] sm:$0xff]  ;;  %v348_v21 = vld [vmem:[#allocation9 + $0x48] sm:$0xff]  ;;  %p804_p1 = scmp.ne.s32.totalorder %s802_s9, %s803_s10  ;;  %p808_p9 = scmp.lt.s32.totalorder %s802_s9, %s1065_s4 }
  0x2f   : > { %392 = vmatpush.msra.mxu3 %v369_v11  ;;  %313 = vmatpush.msra.mxu0 %v286_v9  ;;  %v366_v18 = vld [vmem:[#allocation9 + $0xd8] sm:$0xff]  ;;  %v365_v20 = vld [vmem:[#allocation9 + $0xd0] sm:$0xff]  ;;  %v364_v22 = vld [vmem:[#allocation9 + $0xc8] sm:$0xff]  ;;  %p809_p10 = scmp.lt.s32.totalorder %s807_s23, %s803_s10 }
  0x30   : > { %333 = vmatpush.msra.mxu1 %v287_v10  ;;  %596 = vmatmul.msk.f32.vlgmr.msra.gmra.mxu0 %vm294_vm0, %v285_v12  ;;  %v347_v23 = vld [vmem:[#allocation9 + $0x40] sm:$0xff]  ;;  %v346_v25 = vld [vmem:[#allocation9 + $0x38] sm:$0xff]  ;;  %v345_v27 = vld [vmem:[#allocation9 + $0x30] sm:$0xff]  ;;  %p805_p3 = pnand %p804_p1, %p982_p0 }
  0x31   : > { %597 = vmatmul.msk.f32.vlgmr.msra.gmra.mxu1 %vm294_vm0, %v285_v12  ;;  %373 = vmatpush.msra.mxu2 %v352_v13  ;;  %v363_v24 = vld [vmem:[#allocation9 + $0xc0] sm:$0xff]  ;;  %v362_v26 = vld [vmem:[#allocation9 + $0xb8] sm:$0xff]  ;;  %v361_v28 = vld [vmem:[#allocation9 + $0xb0] sm:$0xff]  ;;  %p810_p12 = por %p809_p10, %p808_p9 }
  0x32   : > { %393 = vmatpush.msra.mxu3 %v368_v14  ;;  %v344_v29 = vld [vmem:[#allocation9 + $0x28] sm:$0xff]  ;;  %v343_v31 = vld [vmem:[#allocation9 + $0x20] sm:$0xff]  ;;  %v342_v33 = vld [vmem:[#allocation9 + $0x18] sm:$0xff]  ;;  %p806_p8 = pneg %p805_p3 }
  0x33   : > { %374 = vmatpush.msra.mxu2 %v351_v15  ;;  %v360_v30 = vld [vmem:[#allocation9 + $0xa8] sm:$0xff]  ;;  %v359_v32 = vld [vmem:[#allocation9 + $0xa0] sm:$0xff]  ;;  %v358_v34 = vld [vmem:[#allocation9 + $0x98] sm:$0xff] }
  0x34   : > { %394 = vmatpush.msra.mxu3 %v367_v16  ;;  %v341_v35 = vld [vmem:[#allocation9 + $0x10] sm:$0xff]  ;;  %v340_v37 = vld [vmem:[#allocation9 + $0x8] sm:$0xff]  ;;  %v339_v39 = vld [vmem:[#allocation9] sm:$0xff]  ;;  %p811_p13 = pnand %p810_p12, %p806_p8 }
  0x35   : > { %375 = vmatpush.msra.mxu2 %v350_v17  ;;  %v357_v36 = vld [vmem:[#allocation9 + $0x90] sm:$0xff]  ;;  %v356_v38 = vld [vmem:[#allocation9 + $0x88] sm:$0xff]  ;;  %v355_v40 = vld [vmem:[#allocation9 + $0x80] sm:$0xff] }
  0x36   : > { %395 = vmatpush.msra.mxu3 %v366_v18  ;;  %v413_v48 = vld [vmem:[#allocation3] sm:$0xff] }
  0x37   : > { %376 = vmatpush.msra.mxu2 %v349_v19  ;;  %v692_v62 = vld [vmem:[%s1064_s3] ss:$0 sm:$0xff] }
  0x38   : > { %396 = vmatpush.msra.mxu3 %v365_v20 }
  0x39   : > { %377 = vmatpush.msra.mxu2 %v348_v21 }
  0x3a   : > { %397 = vmatpush.msra.mxu3 %v364_v22 }
  0x3b   : > { %378 = vmatpush.msra.mxu2 %v347_v23 }
  0x3c   : > { %398 = vmatpush.msra.mxu3 %v363_v24 }
  0x3d   : > { %379 = vmatpush.msra.mxu2 %v346_v25 }
  0x3e   : > { %399 = vmatpush.msra.mxu3 %v362_v26 }
  0x3f   : > { %380 = vmatpush.msra.mxu2 %v345_v27 }
  0x40   : > { %400 = vmatpush.msra.mxu3 %v361_v28 }
  0x41   : > { %381 = vmatpush.msra.mxu2 %v344_v29 }
  0x42   : > { %401 = vmatpush.msra.mxu3 %v360_v30 }
  0x43   : > { %382 = vmatpush.msra.mxu2 %v343_v31 }
  0x44   : > { %402 = vmatpush.msra.mxu3 %v359_v32 }
  0x45   : > { %383 = vmatpush.msra.mxu2 %v342_v33 }
  0x46   : > { %403 = vmatpush.msra.mxu3 %v358_v34 }
  0x47   : > { %384 = vmatpush.msra.mxu2 %v341_v35 }
  0x48   : > { %404 = vmatpush.msra.mxu3 %v357_v36 }
  0x49   : > { %385 = vmatpush.msra.mxu2 %v340_v37 }
  0x4a   : > { %405 = vmatpush.msra.mxu3 %v356_v38 }
  0x4b   : > { %386 = vmatpush.msra.mxu2 %v339_v39 }
  0x4c   : > { %406 = vmatpush.msra.mxu3 %v355_v40 }
  0xad   : > { %v315_v42 = vpop.f32.mrf.mxu0 }
  0xae   : > { %v335_v43 = vpop.f32.mrf.mxu1  ;;  %v414_v44 = vmul.f32 %v315_v42, %v315_v42  ;;  %387 = vmatmul.f32.vlgmr.msra.gmra.mxu2 %v315_v42 }
  0xaf   : > { %v415_v45 = vmul.f32 %v335_v43, %v335_v43  ;;  %407 = vmatmul.f32.vlgmr.msra.gmra.mxu3 %v335_v43 }
  0xb1   : > { %v416_v46 = vadd.f32 %v415_v45, %v414_v44 }
  0xb3   : > { %417 = vadd.xlane.f32.xlu0 %v416_v46 }
 0x126   : > { %v418_v49 = vpop.xlane.xlu0 %417 }
 0x127   : > { %v419_v50 = vadd.f32 %v418_v49, %v413_v48 }
 0x129   : > { %421 = vst.msk [vmem:[#allocation3] sm:$0xff] %vm283_vm1, %v419_v50 }
 0x130   : > { %v425_v51 = vld [vmem:[#allocation3] sm:$0xff] }
 0x131   : > { %693 = vrsqrt.f32 %v425_v51  ;;  %vm433_vm2 = vcmp.eq.f32.partialorder %v425_v51, inf  ;;  %v436_v59 = vand.u32 2147483648, %v425_v51  ;;  %vm435_vm3 = vcmp.eq.f32.partialorder %v425_v51, 0.0  ;;  %v388_v8 = vpop.f32.mrf.mxu2 }
 0x132   : > { %v408_v9 = vpop.f32.mrf.mxu3 }
 0x133   : > { %v409_v12 = vadd.f32 %v408_v9, %v388_v8 }
 0x137   : > { %v694_v52 = vpop.eup %693 }
 0x138   : > { %v427_v53 = vmul.f32 %v694_v52, %v425_v51 }
 0x13a   : > { %v428_v54 = vmul.f32 %v694_v52, %v427_v53 }
 0x13c   : > { %v429_v55 = vmul.f32 0.5, %v428_v54 }
 0x13e   : > { %v430_v56 = vsub.f32 1.5, %v429_v55 }
 0x140   : > { %v431_v57 = vmul.f32 %v694_v52, %v430_v56 }
 0x142   : > { %v432_v58 = vmul.f32 %v431_v57, %v425_v51 }
 0x144   : > { %v434_v60 = vsel %vm433_vm2, %v425_v51, %v432_v58 }
 0x145   : > { %v437_v61 = vsel %vm435_vm3, %v436_v59, %v434_v60 }
 0x146   : > { %441 = vperm.xlu0 %691, %v437_v61  }
 0x1b8   : > { %v442_v63 = vpop.permute.xlu0 %441 }
 0x1b9   : > { %v447_v0 = vmul.f32 %v692_v62, %v442_v63 }
 0x1bb   : > { %v448_v1 = vmax.f32 %v447_v0, 1e-08 }
 0x1bd   : > { %695 = vrcp.f32 %v448_v1  ;;  %v461_v5 = vand.u32 2147483648, %v448_v1  ;;  %v459_v7 = vand.u32 2147483647, %v448_v1  ;;  %vm455_vm5 = vweird.f32 %v448_v1 }
 0x1bf   : > { %v462_v11 = vor.u32 1.1754944e-38, %v461_v5  ;;  %vm460_vm7 = vcmp.eq.f32.partialorder %v459_v7, 8.507059e+37 }
 0x1c3   : > { %v696_v2 = vpop.eup %695 }
 0x1c4   : > { %v451_v3 = vmul.f32 %v696_v2, %v448_v1  ;;  %vm456_vm4 = vweird.f32 %v696_v2 }
 0x1c5   : > { %vm457_vm6 = vmor %vm455_vm5, %vm456_vm4 }
 0x1c6   : > { %v452_v4 = vsub.f32 1.0, %v451_v3 }
 0x1c8   : > { %v453_v6 = vmul.f32 %v696_v2, %v452_v4 }
 0x1ca   : > { %v454_v10 = vadd.f32 %v696_v2, %v453_v6 }
 0x1cc   : > { %v458_v13 = vsel %vm457_vm6, %v696_v2, %v454_v10 }
 0x1cd   : > { %v463_v14 = vsel %vm460_vm7, %v462_v11, %v458_v13 }
 0x1ce   : > { %v464_v15 = vmul.f32 %v463_v14, %v409_v12 }
 0x1d0   : > { %465 = vst [vmem:[%s275_s6] sm:$0xff] %v464_v15 }
 0x1d1   : > { %814 = shalt.err (!%p811_p13)
}
 0x1d2   : > { %612 = dma.vmem_to_hbm [thread:$0]  (%p982_p0), %s480_s18, 128, %s482_s7, %s467_s8  }
 0x1d3 PF: > { %s493_s13 = sand.u32 1, %s853_s15   ;;  %p626_p2 = pnand %p588_p6, %p989_p5 }
 0x1d4   : > { %s494_s26 = scalar_lea.sflag [#allocation6], %s493_s13 }
 0x1d5   : > { %p627_p4 = pneg %p626_p2 }
 0x1d7   : > { %848 = dma.done.wait (%p627_p4), %s494_s26, 128  }
 0x1d8   : > { %850 = vsyncadd (%p627_p4), %s494_s26, 4294967168  ;;  %s21_s20 = sadd.s32 1, %s873_s20   ;;  %s1071_s15 = smov %s857_s16 }
 0x1d9   : > { %p18_p7 = scmp.ge.s32.totalorder %s21_s20, 4   ;;  %s1072_s16 = smov %s861_s17 }
 0x1da   : > { %s1073_s17 = smov %s987_s27  ;;  %s1074_s18 = smov %s869_s19 }
 0x1db   : > { %s1075_s19 = smov %s1077_s12  ;;  %20 = sbr.rel (!%p18_p7) target bundleno = 7 (0x7), region = 99 }
 0x1e0   :  { %500 = vsyncpa [#allocation5], 1 }
 0x1e1   :  { %502 = vsyncpa [#allocation5 + $0x1], 1 }
 0x1e2   :  { %503 = vsyncpa [#allocation8], 1 }
 0x1e3   :  { %504 = vsyncpa [#allocation6], 1 }
 0x1e4   :  { %506 = vsyncpa [#allocation6 + $0x1], 1 }

</bundles_post_ra>
